<compile_context>
chip_gen: v6e
topology: v6e:2x2x1
jax: 0.10.0
libtpu: 0.0.40
codegen_flags: <defaults>
</compile_context>

<pallas_src>
import math
import numpy as np
import jax
import jax.numpy as jnp
from jax.experimental import pallas as pl
from jax.experimental.pallas import tpu as pltpu


# ----------------------------------------------------------------------------
# Mask construction (glue, plain numpy) — replicates the PyTorch __init__ loop
# exactly, including its shift bookkeeping.
# ----------------------------------------------------------------------------
def build_semidense_mask(in_dim, out_dim, in_channels, out_channels,
                         patch_dim_in, patch_dim_out, latent_dim, shift=True):
    in_features = in_dim * in_dim * in_channels + latent_dim
    out_features = out_dim * out_dim * out_channels
    mask = np.zeros((out_features, in_features), dtype=np.float32)
    if latent_dim > 0:
        mask[:, -latent_dim:] = 1.0

    in_patch_idx = 0
    idxs_in_patches = []
    n_out_patches = out_dim * out_dim // (patch_dim_out * patch_dim_out)
    for out_patch_idx in range(n_out_patches):
        if not shift or out_patch_idx != 1:
            row = in_patch_idx // (in_dim // patch_dim_in)
            col = in_patch_idx % (in_dim // patch_dim_in)
            neurons_in_patch = [
                (row * patch_dim_in + p_y) * in_dim + col * patch_dim_in + p_x
                for p_x in range(patch_dim_in) for p_y in range(patch_dim_in)
            ]
            idxs_in_patches += neurons_in_patch
        if shift:
            if out_patch_idx != 0:
                in_patch_idx += 1
        else:
            in_patch_idx += 1

        row = out_patch_idx // (out_dim // patch_dim_out)
        col = out_patch_idx % (out_dim // patch_dim_out)
        neurons_out_patch = [
            (row * patch_dim_out + p_y) * out_dim + col * patch_dim_out + p_x
            for p_x in range(patch_dim_out) for p_y in range(patch_dim_out)
        ]
        neurons_out_patch = [
            n_o_p + ch * (out_dim * out_dim)
            for n_o_p in neurons_out_patch for ch in range(out_channels)
        ]
        context_neurons = [
            n_i_p + ch * (in_dim * in_dim)
            for n_i_p in idxs_in_patches for ch in range(in_channels)
        ]
        for n in neurons_out_patch:
            mask[n, context_neurons] = 1.0
    return mask


# ----------------------------------------------------------------------------
# Small helpers
# ----------------------------------------------------------------------------
def _round_up(x, m):
    return ((x + m - 1) // m) * m


def _vmem_budget_bytes():
    """~70% of the physical per-core VMEM of the current TPU generation."""
    try:
        cap = int(pltpu.get_tpu_info().vmem_capacity_bytes)
    except Exception:
        cap = 64 * 1024 * 1024            # conservative (v7x-sized) fallback
    return max(16 * 1024 * 1024, int(cap * 0.70))


def _pick_out_tile(out_features):
    """Pick tile_o from {128, 256, 512} minimizing O padding waste."""
    best_t, best_pad = None, None
    for t in (128, 256, 512):
        pad = _round_up(out_features, t) - out_features
        if best_pad is None or pad < best_pad or (pad == best_pad and t > best_t):
            best_t, best_pad = t, pad
    return best_t


def _pick_batch_tile(batch, sublane, cap):
    """Pick tile_b (multiple of `sublane`, <= cap) minimizing batch padding."""
    b_al = _round_up(batch, sublane)
    if b_al <= cap:
        return b_al                        # single batch tile, minimal padding
    best_t, best_pad = sublane, None
    t = (cap // sublane) * sublane
    while t >= sublane:
        pad = _round_up(b_al, t) - b_al
        if best_pad is None or pad < best_pad:
            best_t, best_pad = t, pad
            if pad == 0:
                break
        t -= sublane
    return best_t


# ----------------------------------------------------------------------------
# Pallas kernel: one (tile_b, tile_o) output block, K-accumulated on grid axis 2.
#   x_ref: (tile_b, tile_k)   w_ref: (tile_k, tile_o)  [pre-masked, transposed]
#   b_ref: (1, tile_o)        o_ref: (tile_b, tile_o)  acc_ref: f32 scratch
# ----------------------------------------------------------------------------
def _semidense_kernel(x_ref, w_ref, b_ref, o_ref, acc_ref):
    k = pl.program_id(2)

    @pl.when(k == 0)
    def _():
        acc_ref[...] = jnp.zeros_like(acc_ref)

    acc_ref[...] += jnp.dot(x_ref[...], w_ref[...],
                            preferred_element_type=jnp.float32)

    @pl.when(k == pl.num_programs(2) - 1)
    def _():
        o_ref[...] = (acc_ref[...] + b_ref[...].astype(jnp.float32)
                      ).astype(o_ref.dtype)


# ----------------------------------------------------------------------------
# Layer wrapper: weight is prepared ONCE at construction, then reused per call.
# ----------------------------------------------------------------------------
class SemiDensePallas:
    """out = x @ (mask * weight).T + bias, computed on the MXU via Pallas."""

    def __init__(self, weight, mask, bias, *, compute_dtype=jnp.float32,
                 out_dtype=jnp.float32, tile_o=None, max_tile_k=2048,
                 max_tile_b=512):
        weight = jnp.asarray(weight)
        mask = jnp.asarray(mask)
        bias = jnp.asarray(bias)
        O, I = weight.shape
        self.out_features = O
        self.in_features = I
        self.compute_dtype = np.dtype(compute_dtype)
        self.out_dtype = np.dtype(out_dtype)
        # bf16 packs two rows per sublane -> 16-row alignment; f32 -> 8.
        self.sublane = 16 if self.compute_dtype.itemsize < 4 else 8
        self.max_tile_b = max_tile_b
        self.vmem_budget = _vmem_budget_bytes()

        # ---- batch-independent tile choices --------------------------------
        self.tile_o = tile_o if tile_o is not None else _pick_out_tile(O)
        self.O_pad = _round_up(O, self.tile_o)
        k_aligned = _round_up(I, 128)
        # Roomier budgets (v5e/v6e 128 MiB physical) allow a larger K tile.
        k_cap = max_tile_k if self.vmem_budget < (48 << 20) else 2 * max_tile_k
        self.tile_k = min(k_aligned, k_cap)
        self.I_pad = _round_up(I, self.tile_k)

        # ---- ONE-TIME weight preparation (mask, transpose, pad, cast) ------
        # This is the per-call cost the review flagged; doing it once here
        # means the hot path only streams the prepared (I_pad, O_pad) slab.
        w_t = (weight * mask).T                                    # (I, O)
        w_p = jnp.zeros((self.I_pad, self.O_pad), self.compute_dtype)
        w_p = w_p.at[:I, :O].set(w_t.astype(self.compute_dtype))
        b_p = jnp.zeros((1, self.O_pad), jnp.float32)
        b_p = b_p.at[0, :O].set(bias.astype(jnp.float32))
        self.w_p = jax.block_until_ready(w_p)
        self.b_p = jax.block_until_ready(b_p)

    def __call__(self, x):
        B, I = x.shape
        assert I == self.in_features, "in_features mismatch"

        tile_b = _pick_batch_tile(B, self.sublane, self.max_tile_b)
        B_pad = _round_up(B, tile_b)

        if B_pad == B and self.I_pad == I and x.dtype == self.compute_dtype:
            x_p = x
        else:
            x_p = jnp.zeros((B_pad, self.I_pad), self.compute_dtype)
            x_p = x_p.at[:B, :I].set(x.astype(self.compute_dtype))

        tile_o, tile_k = self.tile_o, self.tile_k
        n_b = B_pad // tile_b
        n_o = self.O_pad // tile_o
        n_k = self.I_pad // tile_k

        # --- adaptive grid order for operand residency -----------------------
        # Ordering A (weight-resident): grid=(n_o, n_b, n_k) — weight block
        #   index is constant across the inner batch axis, so the (usually
        #   much larger) weight is DMA'd once while cheap x tiles stream.
        # Ordering B (x-resident): grid=(n_b, n_o, n_k) — the reverse.
        itemsize = self.compute_dtype.itemsize
        w_bytes = self.I_pad * self.O_pad * itemsize
        x_bytes = B_pad * self.I_pad * itemsize
        weight_resident = (w_bytes + n_o * x_bytes) <= (n_b * w_bytes + x_bytes)

        if weight_resident:
            grid = (n_o, n_b, n_k)
            x_spec = pl.BlockSpec((tile_b, tile_k), lambda i, j, k: (j, k))
            w_spec = pl.BlockSpec((tile_k, tile_o), lambda i, j, k: (k, i))
            b_spec = pl.BlockSpec((1, tile_o), lambda i, j, k: (0, i))
            o_spec = pl.BlockSpec((tile_b, tile_o), lambda i, j, k: (j, i))
        else:
            grid = (n_b, n_o, n_k)
            x_spec = pl.BlockSpec((tile_b, tile_k), lambda i, j, k: (i, k))
            w_spec = pl.BlockSpec((tile_k, tile_o), lambda i, j, k: (k, j))
            b_spec = pl.BlockSpec((1, tile_o), lambda i, j, k: (0, j))
            o_spec = pl.BlockSpec((tile_b, tile_o), lambda i, j, k: (i, j))

        out = pl.pallas_call(
            _semidense_kernel,
            out_shape=jax.ShapeDtypeStruct((B_pad, self.O_pad), self.out_dtype),
            grid_spec=pltpu.PrefetchScalarGridSpec(
                num_scalar_prefetch=0,
                grid=grid,
                in_specs=[x_spec, w_spec, b_spec],
                out_specs=o_spec,
                scratch_shapes=[pltpu.VMEM((tile_b, tile_o), jnp.float32)],
            ),
            compiler_params=pltpu.CompilerParams(
                # K axis is a reduction into the scratch accumulator -> last
                # and "arbitrary"; the two independent output axes stay
                # "parallel" so megacore chips (v7x) can shard them.
                dimension_semantics=("parallel", "parallel", "arbitrary"),
                vmem_limit_bytes=int(self.vmem_budget),
            ),
        )(x_p, self.w_p, self.b_p)

        return out[:B, :self.out_features]


# ----------------------------------------------------------------------------
# Driver
# ----------------------------------------------------------------------------
if __name__ == "__main__":
    # Small config consistent with the module's divisibility constraints:
    #   patch_dim_in | in_dim,  patch_dim_out | out_dim,
    #   in_dim/patch_dim_in == out_dim/patch_dim_out
    in_dim, out_dim = 16, 16
    in_channels, out_channels = 1, 1
    patch_dim_in, patch_dim_out = 8, 8
    latent_dim = 32
    batch = 2

    in_features = in_dim * in_dim * in_channels + latent_dim    # 288
    out_features = out_dim * out_dim * out_channels             # 256

    # Deterministic parameter init (mimics kaiming_uniform_(a=sqrt(5)) + bias
    # uniform(-1/sqrt(fan_in), 1/sqrt(fan_in)); synthetic — no checkpoint load)
    key = jax.random.PRNGKey(0)
    k_w, k_b, k_x = jax.random.split(key, 3)
    fan_in = in_features
    w_bound = 1.0 / math.sqrt(fan_in)
    weight = jax.random.uniform(
        k_w, (out_features, in_features), jnp.float32, -w_bound, w_bound)
    bias = jax.random.uniform(
        k_b, (out_features,), jnp.float32, -w_bound, w_bound)

    mask = jnp.asarray(build_semidense_mask(
        in_dim, out_dim, in_channels, out_channels,
        patch_dim_in, patch_dim_out, latent_dim, shift=True))

    # Module pre-multiplies weight by mask at init; forward masks again
    # (idempotent — the layer applies the forward-time mask once at prepare).
    weight = weight * mask

    x = jax.random.normal(k_x, (batch, in_features), jnp.float32)

    # Pure-JAX reference of the forward semantics.
    ref = x @ (mask * weight).T + bias

    # --- f32 path (default): weight prepared once, called repeatedly --------
    layer = SemiDensePallas(weight, mask, bias)          # one-time prepare
    out = jax.block_until_ready(layer(x))
    out2 = jax.block_until_ready(layer(x))               # reuses cached weight
    np.testing.assert_allclose(np.asarray(out), np.asarray(ref),
                               rtol=1e-5, atol=1e-5)
    np.testing.assert_allclose(np.asarray(out2), np.asarray(ref),
                               rtol=1e-5, atol=1e-5)

    # --- bf16 weight/activation path with f32 accumulation (looser check) ---
    layer_bf16 = SemiDensePallas(weight, mask, bias, compute_dtype=jnp.bfloat16)
    out_bf16 = jax.block_until_ready(layer_bf16(x))
    np.testing.assert_allclose(np.asarray(out_bf16), np.asarray(ref),
                               rtol=3e-2, atol=3e-2)

    print("KERNEL_OK")
</pallas_src>

<mosaic_0001>
module attributes {stable_mosaic.version = 11 : i64} {
  func.func @_semidense_kernel(%arg0: i32, %arg1: i32, %arg2: i32, %arg3: memref<8x384xf32, #tpu.memory_space<vmem>>, %arg4: memref<384x256xf32, #tpu.memory_space<vmem>>, %arg5: memref<1x256xf32, #tpu.memory_space<vmem>>, %arg6: memref<8x256xf32, #tpu.memory_space<vmem>>, %arg7: memref<8x256xf32, #tpu.memory_space<vmem>>) attributes {dimension_semantics = [#tpu.dimension_semantics<parallel>, #tpu.dimension_semantics<parallel>, #tpu.dimension_semantics<arbitrary>], iteration_bounds = array<i64: 1, 1, 1>, scalar_prefetch = 0 : i64, scratch_operands = 1 : i64, tpu.core_type = #tpu.core_type<tc>, window_params = [{transform_indices = @transform_0, window_bounds = array<i64: 8, 384>}, {transform_indices = @transform_1, window_bounds = array<i64: 384, 256>}, {transform_indices = @transform_2, window_bounds = array<i64: 1, 256>}, {transform_indices = @transform_3, window_bounds = array<i64: 8, 256>}]} {
    %c0_i32 = arith.constant 0 : i32
    %0 = arith.cmpi eq, %arg2, %c0_i32 : i32
    %1 = arith.extui %0 : i1 to i32
    %c0_i32_0 = arith.constant 0 : i32
    %2 = arith.cmpi ne, %1, %c0_i32_0 : i32
    scf.if %2 {
      %cst_10 = arith.constant 0.000000e+00 : f32
      %12 = vector.broadcast %cst_10 : f32 to vector<8x256xf32>
      %c0_11 = arith.constant 0 : index
      %c0_12 = arith.constant 0 : index
      %13 = vector.load %arg7[%c0_11, %c0_12] : memref<8x256xf32, #tpu.memory_space<vmem>>, vector<8x256xf32>
      tpu.vector_store %arg7[%c0_11, %c0_12], %12 {strides = array<i32>} : memref<8x256xf32, #tpu.memory_space<vmem>>, vector<8x256xf32>,
    } else {
    }
    %c0 = arith.constant 0 : index
    %c0_1 = arith.constant 0 : index
    %3 = vector.load %arg7[%c0, %c0_1] : memref<8x256xf32, #tpu.memory_space<vmem>>, vector<8x256xf32>
    %c0_2 = arith.constant 0 : index
    %c0_3 = arith.constant 0 : index
    %4 = vector.load %arg3[%c0_2, %c0_3] : memref<8x384xf32, #tpu.memory_space<vmem>>, vector<8x384xf32>
    %c0_4 = arith.constant 0 : index
    %c0_5 = arith.constant 0 : index
    %5 = vector.load %arg4[%c0_4, %c0_5] : memref<384x256xf32, #tpu.memory_space<vmem>>, vector<384x256xf32>
    %cst = arith.constant dense<0.000000e+00> : vector<8x256xf32>
    %6 = tpu.matmul %4, %5, %cst {dimension_numbers = #tpu.dot_dimension_numbers<[1], [0], [0], [1], [0, 0, 1, 1], [], []>} : vector<8x384xf32>, vector<384x256xf32>, vector<8x256xf32> -> vector<8x256xf32>
    %7 = arith.addf %3, %6 : vector<8x256xf32>
    %c0_6 = arith.constant 0 : index
    %c0_7 = arith.constant 0 : index
    %8 = vector.load %arg7[%c0_6, %c0_7] : memref<8x256xf32, #tpu.memory_space<vmem>>, vector<8x256xf32>
    tpu.vector_store %arg7[%c0_6, %c0_7], %7 {strides = array<i32>} : memref<8x256xf32, #tpu.memory_space<vmem>>, vector<8x256xf32>,
    %c0_i32_8 = arith.constant 0 : i32
    %9 = arith.cmpi eq, %arg2, %c0_i32_8 : i32
    %10 = arith.extui %9 : i1 to i32
    %c0_i32_9 = arith.constant 0 : i32
    %11 = arith.cmpi ne, %10, %c0_i32_9 : i32
    scf.if %11 {
      %c0_10 = arith.constant 0 : index
      %c0_11 = arith.constant 0 : index
      %12 = vector.load %arg7[%c0_10, %c0_11] : memref<8x256xf32, #tpu.memory_space<vmem>>, vector<8x256xf32>
      %c0_12 = arith.constant 0 : index
      %c0_13 = arith.constant 0 : index
      %13 = vector.load %arg5[%c0_12, %c0_13] : memref<1x256xf32, #tpu.memory_space<vmem>>, vector<1x256xf32>
      %14 = vector.broadcast %13 : vector<1x256xf32> to vector<8x256xf32>
      %15 = arith.addf %12, %14 : vector<8x256xf32>
      %c0_14 = arith.constant 0 : index
      %c0_15 = arith.constant 0 : index
      %16 = vector.load %arg6[%c0_14, %c0_15] : memref<8x256xf32, #tpu.memory_space<vmem>>, vector<8x256xf32>
      tpu.vector_store %arg6[%c0_14, %c0_15], %15 {strides = array<i32>} : memref<8x256xf32, #tpu.memory_space<vmem>>, vector<8x256xf32>,
    } else {
    }
    return
  }
  func.func @transform_0(%arg0: i32, %arg1: i32, %arg2: i32) -> (i32, i32) {
    %c0_i32 = arith.constant 0 : i32
    return %arg1, %arg2 : i32, i32
  }
  func.func @transform_1(%arg0: i32, %arg1: i32, %arg2: i32) -> (i32, i32) {
    %c0_i32 = arith.constant 0 : i32
    return %arg2, %arg0 : i32, i32
  }
  func.func @transform_2(%arg0: i32, %arg1: i32, %arg2: i32) -> (i32, i32) {
    %c0_i32 = arith.constant 0 : i32
    %c0_i32_0 = arith.constant 0 : i32
    return %c0_i32, %arg0 : i32, i32
  }
  func.func @transform_3(%arg0: i32, %arg1: i32, %arg2: i32) -> (i32, i32) {
    %c0_i32 = arith.constant 0 : i32
    return %arg1, %arg0 : i32, i32
  }
}

</mosaic_0001>

<bundles_post_ra>
// kernel: tpu_custom_call.1
= control target key start
LH: loop header
LB: loop body
LE: loop exit
PB: predicated region body
PF: predicated region fallthrough
CT: control target
= control target key end

     0   :  { %8 = vsyncpa [#allocation4], 0  ;;  %s441_s0 = inlined_call_operand.hbm [shape: f32[8,384], index: 0, kind: input, shape index: {}]   ;;  %s442_s1 = inlined_call_operand.hbm [shape: f32[384,256], index: 1, kind: input, shape index: {}]   ;;  %s443_s2 = inlined_call_operand.vmem [shape: f32[1,256], index: 2, kind: input, shape index: {}]   ;;  %s444_s3 = inlined_call_operand.hbm [shape: f32[8,256], index: 3, kind: output, shape index: {}]  }
   0x1   :  { %9 = vsyncpa [#allocation7], 0 }
   0x2   :  { %10 = vsyncpa [#allocation5], 0  ;;  %s403_s12 = smov [#allocation3]   ;;  %s404_s14 = smov [#allocation6]  }
   0x3   :  { %s17_s13 = sshll.u32 %s403_s12, 4  ;;  %s26_s15 = sshll.u32 %s404_s14, 4  ;;  %s18_s13 = int_to_ptr.vmem [resolvable:$true] %s17_s13  ;;  %s27_s15 = int_to_ptr.vmem [resolvable:$true] %s26_s15 }
   0x4   :  { %s345_s16 = scalar_lea.vmem %s18_s13, 384  ;;  %p350_p1 = scmp.lt.s32.totalorder %s18_s13, %s18_s13 }
   0x5   :  { %p346_p0 = scmp.ne.s32.totalorder %s18_s13, %s345_s16  ;;  %p351_p2 = scmp.lt.s32.totalorder %s345_s16, %s345_s16 }
   0x7   :  { %p352_p3 = por %p351_p2, %p350_p1 }
   0x9   :  { %p353_p4 = pnand %p352_p3, %p346_p0 }
   0xb   :  { %356 = shalt.err (!%p353_p4)
}
   0xc   :  { %20 = dma.hbm_to_vmem [thread:$0]  %s441_s0, 384, %s18_s13, [#allocation4]  }
   0xd   :  { %s365_s19 = scalar_lea.vmem %s27_s15, 12288  ;;  %p370_p6 = scmp.lt.s32.totalorder %s27_s15, %s27_s15 }
   0xe   :  { %p366_p5 = scmp.ne.s32.totalorder %s27_s15, %s365_s19  ;;  %p371_p7 = scmp.lt.s32.totalorder %s365_s19, %s365_s19 }
  0x10   :  { %p372_p8 = por %p371_p7, %p370_p6 }
  0x12   :  { %p373_p9 = pnand %p372_p8, %p366_p5 }
  0x14   :  { %376 = shalt.err (!%p373_p9)
}
  0x15   :  { %s405_s20 = smov 256   ;;  %s406_s21 = smov 16  }
  0x16   :  { %32 = dma.hbm_to_vmem [thread:$0]  %s442_s1, 12288, %s27_s15, [#allocation7], %s405_s20, %s405_s20, %s406_s21  }
  0x17   :  { %397 = dma.done.wait [#allocation4], 384  }
  0x18   :  { %398 = vsyncadd [#allocation4], 4294966912 }
  0x19   :  { %399 = dma.done.wait [#allocation7], 12288  }
  0x1a   :  { %400 = vsyncadd [#allocation7], 4294955008  ;;  %v407_v0 = vmov 0.0   ;;  %v83_v1 = vld [vmem:[#allocation6 + $0xf8] sm:$0xff]  ;;  %v82_v2 = vld [vmem:[#allocation6 + $0xf0] sm:$0xff]  ;;  %s408_s24 = smov [#allocation8]  }
  0x1b   :  { %283 = vmatprep.mubr.f32.mxu1 %v407_v0  ;;  %v81_v3 = vld [vmem:[#allocation6 + $0xe8] sm:$0xff]  ;;  %148 = vmatprep.subr.mxu0 %v83_v1  ;;  %v80_v4 = vld [vmem:[#allocation6 + $0xe0] sm:$0xff]  ;;  %v79_v5 = vld [vmem:[#allocation6 + $0xd8] sm:$0xff]  ;;  %s321_s25 = sshll.u32 %s408_s24, 4  ;;  %s322_s25 = int_to_ptr.vmem [resolvable:$true] %s321_s25 }
  0x1c   :  { %149 = vmatpush1.msra.mxu0 %v82_v2  ;;  %v78_v6 = vld [vmem:[#allocation6 + $0xd0] sm:$0xff]  ;;  %v77_v7 = vld [vmem:[#allocation6 + $0xc8] sm:$0xff]  ;;  %v76_v8 = vld [vmem:[#allocation6 + $0xc0] sm:$0xff]  ;;  %s377_s26 = scalar_lea.vmem %s322_s25, 256  ;;  %p382_p11 = scmp.lt.s32.totalorder %s322_s25, %s322_s25 }
  0x1d   :  { %150 = vmatprep.subr.mxu0 %v81_v3  ;;  %v75_v9 = vld [vmem:[#allocation6 + $0xb8] sm:$0xff]  ;;  %v74_v10 = vld [vmem:[#allocation6 + $0xb0] sm:$0xff]  ;;  %v73_v11 = vld [vmem:[#allocation6 + $0xa8] sm:$0xff]  ;;  %p378_p10 = scmp.ne.s32.totalorder %s322_s25, %s377_s26  ;;  %p383_p12 = scmp.lt.s32.totalorder %s377_s26, %s377_s26 }
  0x1e   :  { %151 = vmatpush1.msra.mxu0 %v80_v4  ;;  %v72_v12 = vld [vmem:[#allocation6 + $0xa0] sm:$0xff]  ;;  %v71_v13 = vld [vmem:[#allocation6 + $0x98] sm:$0xff]  ;;  %v70_v15 = vld [vmem:[#allocation6 + $0x90] sm:$0xff] }
  0x1f   :  { %152 = vmatprep.subr.mxu0 %v79_v5  ;;  %v147_v14 = vld [vmem:[#allocation6 + $0x2f8] sm:$0xff]  ;;  %v146_v16 = vld [vmem:[#allocation6 + $0x2f0] sm:$0xff]  ;;  %v145_v17 = vld [vmem:[#allocation6 + $0x2e8] sm:$0xff]  ;;  %p384_p13 = por %p383_p12, %p382_p11 }
  0x20   :  { %153 = vmatpush1.msra.mxu0 %v78_v6  ;;  %219 = vmatprep.subr.mxu1 %v147_v14  ;;  %v69_v18 = vld [vmem:[#allocation6 + $0x88] sm:$0xff]  ;;  %v144_v19 = vld [vmem:[#allocation6 + $0x2e0] sm:$0xff]  ;;  %v143_v21 = vld [vmem:[#allocation6 + $0x2d8] sm:$0xff] }
  0x21   :  { %154 = vmatprep.subr.mxu0 %v77_v7  ;;  %220 = vmatpush1.msra.mxu1 %v146_v16  ;;  %v68_v20 = vld [vmem:[#allocation6 + $0x80] sm:$0xff]  ;;  %v142_v22 = vld [vmem:[#allocation6 + $0x2d0] sm:$0xff]  ;;  %v67_v23 = vld [vmem:[#allocation6 + $0x78] sm:$0xff]  ;;  %p385_p0 = pnand %p384_p13, %p378_p10 }
  0x22   :  { %155 = vmatpush1.msra.mxu0 %v76_v8  ;;  %221 = vmatprep.subr.mxu1 %v145_v17  ;;  %v141_v24 = vld [vmem:[#allocation6 + $0x2c8] sm:$0xff]  ;;  %v66_v25 = vld [vmem:[#allocation6 + $0x70] sm:$0xff]  ;;  %v140_v26 = vld [vmem:[#allocation6 + $0x2c0] sm:$0xff] }
  0x23   :  { %156 = vmatprep.subr.mxu0 %v75_v9  ;;  %222 = vmatpush1.msra.mxu1 %v144_v19  ;;  %v65_v27 = vld [vmem:[#allocation6 + $0x68] sm:$0xff]  ;;  %v139_v28 = vld [vmem:[#allocation6 + $0x2b8] sm:$0xff]  ;;  %v64_v29 = vld [vmem:[#allocation6 + $0x60] sm:$0xff] }
  0x24   :  { %157 = vmatpush1.msra.mxu0 %v74_v10  ;;  %223 = vmatprep.subr.mxu1 %v143_v21  ;;  %v138_v30 = vld [vmem:[#allocation6 + $0x2b0] sm:$0xff]  ;;  %v63_v31 = vld [vmem:[#allocation6 + $0x58] sm:$0xff]  ;;  %v137_v32 = vld [vmem:[#allocation6 + $0x2a8] sm:$0xff] }
  0x25   :  { %158 = vmatprep.subr.mxu0 %v73_v11  ;;  %224 = vmatpush1.msra.mxu1 %v142_v22  ;;  %v62_v33 = vld [vmem:[#allocation6 + $0x50] sm:$0xff]  ;;  %v136_v34 = vld [vmem:[#allocation6 + $0x2a0] sm:$0xff]  ;;  %v61_v35 = vld [vmem:[#allocation6 + $0x48] sm:$0xff] }
  0x26   :  { %159 = vmatpush1.msra.mxu0 %v72_v12  ;;  %225 = vmatprep.subr.mxu1 %v141_v24  ;;  %v135_v36 = vld [vmem:[#allocation6 + $0x298] sm:$0xff]  ;;  %v60_v37 = vld [vmem:[#allocation6 + $0x40] sm:$0xff]  ;;  %v134_v38 = vld [vmem:[#allocation6 + $0x290] sm:$0xff] }
  0x27   :  { %160 = vmatprep.subr.mxu0 %v71_v13  ;;  %226 = vmatpush1.msra.mxu1 %v140_v26  ;;  %v59_v39 = vld [vmem:[#allocation6 + $0x38] sm:$0xff]  ;;  %v133_v40 = vld [vmem:[#allocation6 + $0x288] sm:$0xff]  ;;  %v58_v41 = vld [vmem:[#allocation6 + $0x30] sm:$0xff] }
  0x28   :  { %161 = vmatpush1.msra.mxu0 %v70_v15  ;;  %227 = vmatprep.subr.mxu1 %v139_v28  ;;  %v132_v42 = vld [vmem:[#allocation6 + $0x280] sm:$0xff]  ;;  %v57_v43 = vld [vmem:[#allocation6 + $0x28] sm:$0xff]  ;;  %v131_v44 = vld [vmem:[#allocation6 + $0x278] sm:$0xff] }
  0x29   :  { %162 = vmatprep.subr.mxu0 %v69_v18  ;;  %228 = vmatpush1.msra.mxu1 %v138_v30  ;;  %v56_v45 = vld [vmem:[#allocation6 + $0x20] sm:$0xff]  ;;  %v130_v46 = vld [vmem:[#allocation6 + $0x270] sm:$0xff]  ;;  %v55_v47 = vld [vmem:[#allocation6 + $0x18] sm:$0xff] }
  0x2a   :  { %163 = vmatpush1.msra.mxu0 %v68_v20  ;;  %229 = vmatprep.subr.mxu1 %v137_v32  ;;  %v129_v48 = vld [vmem:[#allocation6 + $0x268] sm:$0xff]  ;;  %v54_v49 = vld [vmem:[#allocation6 + $0x10] sm:$0xff]  ;;  %v128_v50 = vld [vmem:[#allocation6 + $0x260] sm:$0xff] }
  0x2b   :  { %164 = vmatprep.subr.mxu0 %v67_v23  ;;  %230 = vmatpush1.msra.mxu1 %v136_v34  ;;  %v53_v51 = vld [vmem:[#allocation6 + $0x8] sm:$0xff]  ;;  %v127_v52 = vld [vmem:[#allocation6 + $0x258] sm:$0xff]  ;;  %v52_v53 = vld [vmem:[#allocation6] sm:$0xff] }
  0x2c   :  { %165 = vmatpush1.msra.mxu0 %v66_v25  ;;  %231 = vmatprep.subr.mxu1 %v135_v36  ;;  %v126_v54 = vld [vmem:[#allocation6 + $0x250] sm:$0xff]  ;;  %v115_v55 = vld [vmem:[#allocation6 + $0x1f8] sm:$0xff]  ;;  %v125_v56 = vld [vmem:[#allocation6 + $0x248] sm:$0xff]  ;;  %v301_v36 = vlaneseq }
  0x2d   :  { %166 = vmatprep.subr.mxu0 %v65_v27  ;;  %232 = vmatpush1.msra.mxu1 %v134_v38  ;;  %v114_v57 = vld [vmem:[#allocation6 + $0x1f0] sm:$0xff]  ;;  %v124_v58 = vld [vmem:[#allocation6 + $0x240] sm:$0xff]  ;;  %v113_v59 = vld [vmem:[#allocation6 + $0x1e8] sm:$0xff] }
  0x2e   :  { %167 = vmatpush1.msra.mxu0 %v64_v29  ;;  %233 = vmatprep.subr.mxu1 %v133_v40  ;;  %v123_v60 = vld [vmem:[#allocation6 + $0x238] sm:$0xff]  ;;  %v112_v61 = vld [vmem:[#allocation6 + $0x1e0] sm:$0xff]  ;;  %v122_v62 = vld [vmem:[#allocation6 + $0x230] sm:$0xff] }
  0x2f   :  { %168 = vmatprep.subr.mxu0 %v63_v31  ;;  %234 = vmatpush1.msra.mxu1 %v132_v42  ;;  %v111_v63 = vld [vmem:[#allocation6 + $0x1d8] sm:$0xff]  ;;  %v121_v0 = vld [vmem:[#allocation6 + $0x228] sm:$0xff]  ;;  %v110_v1 = vld [vmem:[#allocation6 + $0x1d0] sm:$0xff] }
  0x30   :  { %169 = vmatpush1.msra.mxu0 %v62_v33  ;;  %235 = vmatprep.subr.mxu1 %v131_v44  ;;  %v120_v2 = vld [vmem:[#allocation6 + $0x220] sm:$0xff]  ;;  %v109_v3 = vld [vmem:[#allocation6 + $0x1c8] sm:$0xff]  ;;  %v119_v4 = vld [vmem:[#allocation6 + $0x218] sm:$0xff] }
  0x31   :  { %170 = vmatprep.subr.mxu0 %v61_v35  ;;  %236 = vmatpush1.msra.mxu1 %v130_v46  ;;  %v108_v5 = vld [vmem:[#allocation6 + $0x1c0] sm:$0xff]  ;;  %v118_v6 = vld [vmem:[#allocation6 + $0x210] sm:$0xff]  ;;  %v107_v7 = vld [vmem:[#allocation6 + $0x1b8] sm:$0xff] }
  0x32   :  { %171 = vmatpush1.msra.mxu0 %v60_v37  ;;  %237 = vmatprep.subr.mxu1 %v129_v48  ;;  %v117_v8 = vld [vmem:[#allocation6 + $0x208] sm:$0xff]  ;;  %v106_v9 = vld [vmem:[#allocation6 + $0x1b0] sm:$0xff]  ;;  %v116_v10 = vld [vmem:[#allocation6 + $0x200] sm:$0xff]  ;;  %v302_v37 = vshrl.u32 %v301_v36, 7 }
  0x33   :  { %172 = vmatprep.subr.mxu0 %v59_v39  ;;  %238 = vmatpush1.msra.mxu1 %v128_v50  ;;  %v105_v11 = vld [vmem:[#allocation6 + $0x1a8] sm:$0xff]  ;;  %v51_v12 = vld [vmem:[#allocation3 + $0x10] sm:$0xff]  ;;  %v104_v13 = vld [vmem:[#allocation6 + $0x1a0] sm:$0xff] }
  0x34   :  { %173 = vmatpush1.msra.mxu0 %v58_v41  ;;  %239 = vmatprep.subr.mxu1 %v127_v52  ;;  %v50_v14 = vld [vmem:[#allocation3 + $0x8] sm:$0xff]  ;;  %v103_v15 = vld [vmem:[#allocation6 + $0x198] sm:$0xff]  ;;  %v101_v17 = vld [vmem:[#allocation6 + $0x188] sm:$0xff]  ;;  %v303_v38 = vsub.s32 0, %v302_v37  ;;  %v307_v40 = vsub.s32 1, %v302_v37 }
  0x35   :  { %174 = vmatprep.subr.mxu0 %v57_v43  ;;  %240 = vmatpush1.msra.mxu1 %v126_v54  ;;  %v102_v16 = vld [vmem:[#allocation6 + $0x190] sm:$0xff]  ;;  %v100_v18 = vld [vmem:[#allocation6 + $0x180] sm:$0xff]  ;;  %v99_v19 = vld [vmem:[#allocation6 + $0x178] sm:$0xff] }
  0x36   :  { %175 = vmatpush1.msra.mxu0 %v56_v45  ;;  %241 = vmatprep.subr.mxu1 %v125_v56  ;;  %v98_v20 = vld [vmem:[#allocation6 + $0x170] sm:$0xff]  ;;  %v97_v21 = vld [vmem:[#allocation6 + $0x168] sm:$0xff]  ;;  %v96_v22 = vld [vmem:[#allocation6 + $0x160] sm:$0xff] }
  0x37   :  { %176 = vmatprep.subr.mxu0 %v55_v47  ;;  %242 = vmatpush1.msra.mxu1 %v124_v58  ;;  %v95_v23 = vld [vmem:[#allocation6 + $0x158] sm:$0xff]  ;;  %v94_v24 = vld [vmem:[#allocation6 + $0x150] sm:$0xff]  ;;  %v93_v25 = vld [vmem:[#allocation6 + $0x148] sm:$0xff] }
  0x38   :  { %177 = vmatpush1.msra.mxu0 %v54_v49  ;;  %243 = vmatprep.subr.mxu1 %v123_v60  ;;  %v92_v26 = vld [vmem:[#allocation6 + $0x140] sm:$0xff]  ;;  %v91_v27 = vld [vmem:[#allocation6 + $0x138] sm:$0xff]  ;;  %v90_v28 = vld [vmem:[#allocation6 + $0x130] sm:$0xff] }
  0x39   :  { %178 = vmatprep.subr.mxu0 %v53_v51  ;;  %244 = vmatpush1.msra.mxu1 %v122_v62  ;;  %v89_v29 = vld [vmem:[#allocation6 + $0x128] sm:$0xff]  ;;  %v88_v30 = vld [vmem:[#allocation6 + $0x120] sm:$0xff]  ;;  %v87_v31 = vld [vmem:[#allocation6 + $0x118] sm:$0xff] }
  0x3a   :  { %179 = vmatpush1.msra.mxu0 %v52_v53  ;;  %245 = vmatprep.subr.mxu1 %v121_v0  ;;  %v86_v32 = vld [vmem:[#allocation6 + $0x110] sm:$0xff]  ;;  %v85_v33 = vld [vmem:[#allocation6 + $0x108] sm:$0xff]  ;;  %v84_v34 = vld [vmem:[#allocation6 + $0x100] sm:$0xff] }
  0x3b   :  { %180 = vmatprep.subr.mxu0 %v115_v55  ;;  %246 = vmatpush1.msra.mxu1 %v120_v2  ;;  %v49_v35 = vld [vmem:[#allocation3] sm:$0xff] }
  0x3c   :  { %181 = vmatpush2.msra.mxu0 %v114_v57  ;;  %247 = vmatprep.subr.mxu1 %v119_v4  ;;  %v299_v39 = vld [vmem:[%s443_s2] sm:$0x3] }
  0x3d   :  { %182 = vmatprep.subr.mxu0 %v113_v59  ;;  %248 = vmatpush1.msra.mxu1 %v118_v6  ;;  %v304_v42 = vrot.slane %v299_v39, %v303_v38  ;;  %v308_v45 = vrot.slane %v299_v39, %v307_v40 }
  0x3e   :  { %183 = vmatpush2.msra.mxu0 %v112_v61  ;;  %249 = vmatprep.subr.mxu1 %v117_v8 }
  0x3f   :  { %184 = vmatprep.subr.mxu0 %v111_v63  ;;  %250 = vmatpush1.msra.mxu1 %v116_v10 }
  0x40   :  { %185 = vmatpush2.msra.mxu0 %v110_v1  ;;  %284 = vmatmul.mubr.f32.vlgmr.msra.gmra.mxu1 %v51_v12 }
  0x41   :  { %186 = vmatprep.subr.mxu0 %v109_v3  ;;  %212 = vmatprep.mubr.f32.mxu0 %v50_v14 }
  0x42   :  { %187 = vmatpush2.msra.mxu0 %v108_v5 }
  0x43   :  { %188 = vmatprep.subr.mxu0 %v107_v7 }
  0x44   :  { %189 = vmatpush2.msra.mxu0 %v106_v9 }
  0x45   :  { %190 = vmatprep.subr.mxu0 %v105_v11 }
  0x46   :  { %191 = vmatpush2.msra.mxu0 %v104_v13 }
  0x47   :  { %192 = vmatprep.subr.mxu0 %v103_v15 }
  0x48   :  { %193 = vmatpush2.msra.mxu0 %v102_v16 }
  0x49   :  { %194 = vmatprep.subr.mxu0 %v101_v17 }
  0x4a   :  { %195 = vmatpush2.msra.mxu0 %v100_v18 }
  0x4b   :  { %196 = vmatprep.subr.mxu0 %v99_v19 }
  0x4c   :  { %197 = vmatpush2.msra.mxu0 %v98_v20 }
  0x4d   :  { %198 = vmatprep.subr.mxu0 %v97_v21 }
  0x4e   :  { %199 = vmatpush2.msra.mxu0 %v96_v22 }
  0x4f   :  { %200 = vmatprep.subr.mxu0 %v95_v23 }
  0x50   :  { %201 = vmatpush2.msra.mxu0 %v94_v24 }
  0x51   :  { %202 = vmatprep.subr.mxu0 %v93_v25 }
  0x52   :  { %203 = vmatpush2.msra.mxu0 %v92_v26 }
  0x53   :  { %204 = vmatprep.subr.mxu0 %v91_v27 }
  0x54   :  { %205 = vmatpush2.msra.mxu0 %v90_v28 }
  0x55   :  { %206 = vmatprep.subr.mxu0 %v89_v29 }
  0x56   :  { %207 = vmatpush2.msra.mxu0 %v88_v30 }
  0x57   :  { %208 = vmatprep.subr.mxu0 %v87_v31 }
  0x58   :  { %209 = vmatpush2.msra.mxu0 %v86_v32 }
  0x59   :  { %210 = vmatprep.subr.mxu0 %v85_v33 }
  0x5a   :  { %211 = vmatpush2.msra.mxu0 %v84_v34 }
  0x5b   :  { %213 = vmatmul.mubr.f32.vlgmr.msra.gmra.mxu0 %v49_v35 }
 0x100   :  { %v285_v41 = vpop.f32.mrf.mxu1 }
 0x102   :  { %v287_v46 = vpop.f32.mrf.mxu1 }
 0x11b   :  { %v214_v43 = vpop.f32.mrf.mxu0 }
 0x11c   :  { %v286_v44 = vadd.f32 %v285_v41, %v214_v43 }
 0x11d   :  { %v216_v47 = vpop.f32.mrf.mxu0 }
 0x11e   :  { %v311_v48 = vadd.f32 %v304_v42, %v286_v44  ;;  %v288_v49 = vadd.f32 %v287_v46, %v216_v47 }
 0x120   :  { %313 = vst [vmem:[#allocation8] sm:$0xff] %v311_v48  ;;  %v312_v50 = vadd.f32 %v308_v45, %v288_v49 }
 0x122   :  { %314 = vst [vmem:[#allocation8 + $0x8] sm:$0xff] %v312_v50 }
 0x123   :  { %388 = shalt.err (!%p385_p0)
}
 0x124   :  { %324 = dma.vmem_to_hbm [thread:$0]  %s322_s25, 256, %s444_s3, [#allocation5]  }
 0x125   :  { %401 = dma.done.wait [#allocation5], 256  }
 0x126   :  { %402 = vsyncadd [#allocation5], 4294967040 }
 0x127   :  { %328 = vsyncpa [#allocation4], 1 }
 0x128   :  { %329 = vsyncpa [#allocation7], 1 }
 0x129   :  { %330 = vsyncpa [#allocation5], 1 }

</bundles_post_ra>
